<compile_context>
chip_gen: v5e
topology: v5e:2x2
jax: 0.10.0
libtpu: 0.0.40
codegen_flags: <defaults>
</compile_context>

<pallas_src>
from typing import List, Sequence, Tuple, Union

import numpy as np
import jax
import jax.numpy as jnp
from jax.experimental import pallas as pl
from jax.experimental.pallas import tpu as pltpu

LANE = 128      # pad every feature dim to a multiple of this (256 also fine on v6e/v7x)
SUBLANE = 8     # pad batch to a multiple of this


def _round_up(x: int, m: int) -> int:
    return ((x + m - 1) // m) * m


# ----------------------------------------------------------------------------
# Fused decoder kernel
# ----------------------------------------------------------------------------
def _make_decoder_kernel(n_hidden: int):
    def kernel(*refs):
        x_ref = refs[0]
        tag_ref = refs[-2]
        out_ref = refs[-1]
        params = refs[1:-2]                 # alternating (w, b) for every layer

        h = x_ref[...].astype(jnp.float32)
        for i in range(n_hidden):
            w = params[2 * i][...]          # bf16, (K_pad, N_pad)
            b = params[2 * i + 1][...]      # f32,  (1, N_pad)
            h = jnp.dot(h.astype(jnp.bfloat16), w,
                        preferred_element_type=jnp.float32) + b
            h = jnp.maximum(h, 0.0)         # ReLU in f32 on the VPU

        w = params[-2][...]
        b = params[-1][...]
        y = jnp.dot(h.astype(jnp.bfloat16), w,
                    preferred_element_type=jnp.float32) + b

        # Fused continuous-distribution-arg epilogue.
        # tag: -1 -> raw (disc logits / padding), 0 -> df, 1 -> loc, 2 -> scale
        tag = tag_ref[...]                                       # (1, N_pad) f32
        df = pl.reciprocal(jnp.exp(y * -0.5) * 27.5 + 2.5, approx=True)
        scale = jnp.exp(y * 0.5)
        out_ref[...] = jnp.where(tag == 0.0, df,
                                 jnp.where(tag == 2.0, scale, y))

    return kernel


def decoder_forward(
    z: jax.Array,
    weights_bf16: List[jax.Array],
    biases_f32: List[jax.Array],
    col_tag: jax.Array,
    *,
    batch_tile: int = None,
) -> jax.Array:
    """Run the whole decoder (MLP + distribution-arg transform) in one kernel."""
    n_hidden = len(weights_bf16) - 1
    batch, in_dim = z.shape
    in_pad = weights_bf16[0].shape[0]
    out_pad = weights_bf16[-1].shape[1]

    if batch_tile is None:
        batch_tile = LANE if batch >= LANE else _round_up(batch, SUBLANE)
    batch_pad = _round_up(max(batch, batch_tile), batch_tile)

    # Zero-pad input: padded columns hit zero weight rows, padded rows are
    # sliced off after the call.
    z_pad = jnp.zeros((batch_pad, in_pad), jnp.float32)
    z_pad = z_pad.at[:batch, :in_dim].set(z.astype(jnp.float32))

    args = [z_pad]
    in_specs = [pl.BlockSpec((batch_tile, in_pad), lambda i: (i, 0))]
    for w, b in zip(weights_bf16, biases_f32):
        args.append(w)
        args.append(b)
        # Constant block index -> weights/biases stay VMEM-resident across
        # batch tiles (not re-DMA'd per grid step).
        in_specs.append(pl.BlockSpec(w.shape, lambda i: (0, 0)))
        in_specs.append(pl.BlockSpec(b.shape, lambda i: (0, 0)))
    args.append(col_tag)
    in_specs.append(pl.BlockSpec(col_tag.shape, lambda i: (0, 0)))

    out = pl.pallas_call(
        _make_decoder_kernel(n_hidden),
        grid=(batch_pad // batch_tile,),
        in_specs=in_specs,
        out_specs=pl.BlockSpec((batch_tile, out_pad), lambda i: (i, 0)),
        out_shape=jax.ShapeDtypeStruct((batch_pad, out_pad), jnp.float32),
        compiler_params=pltpu.CompilerParams(
            dimension_semantics=("parallel",),       # megacore-shard batch tiles (v7x)
            vmem_limit_bytes=32 * 1024 * 1024,       # explicit budget (safe on v5e..v7x)
        ),
    )(*args)
    return out[:batch]


# ----------------------------------------------------------------------------
# MultimodalDecoder (JAX / Pallas)
# ----------------------------------------------------------------------------
class MultimodalDecoderPallas:
    def __init__(
        self,
        disc_dims: Sequence[Tuple[int, int]],
        cont_dims: Sequence[int],
        compress_dims: Union[int, Sequence[int]],
        embedding_dim: int,
        key: jax.Array,
    ) -> None:
        self.disc_dims = list(disc_dims)
        self.disc_dims_1d = [a * b for a, b in disc_dims]
        self.cont_dims = list(cont_dims)
        self.disc_sz = sum(self.disc_dims_1d)
        self.cont_sz = sum(cont_dims)
        self.output_dim = self.disc_sz + 3 * self.cont_sz

        if isinstance(compress_dims, int):
            compress_dims = [compress_dims]
        dims = [embedding_dim, *compress_dims, self.output_dim]

        # Reference (unpadded, f32) parameters.  Note: init does not match
        # PyTorch's kaiming-uniform; irrelevant when real weights are loaded.
        self.weights_f32: List[jax.Array] = []
        self.biases_f32: List[jax.Array] = []
        for d_in, d_out in zip(dims[:-1], dims[1:]):
            key, wk, bk = jax.random.split(key, 3)
            scale = 1.0 / jnp.sqrt(jnp.float32(d_in))
            self.weights_f32.append(
                jax.random.normal(wk, (d_in, d_out), jnp.float32) * scale)
            self.biases_f32.append(
                jax.random.normal(bk, (1, d_out), jnp.float32) * 0.01)

        # Kernel parameters: lane-padded, weights in bf16, biases in f32.
        # Padded rows/cols are zero -> inert through ReLU, sliced off later.
        self.dims_pad = [_round_up(d, LANE) for d in dims]
        self.weights_bf16: List[jax.Array] = []
        self.biases_pad: List[jax.Array] = []
        for li, (w, b) in enumerate(zip(self.weights_f32, self.biases_f32)):
            d_in_p, d_out_p = self.dims_pad[li], self.dims_pad[li + 1]
            wp = jnp.zeros((d_in_p, d_out_p), jnp.float32)
            wp = wp.at[: w.shape[0], : w.shape[1]].set(w)
            bp = jnp.zeros((1, d_out_p), jnp.float32)
            bp = bp.at[:, : b.shape[1]].set(b)
            self.weights_bf16.append(wp.astype(jnp.bfloat16))
            self.biases_pad.append(bp)

        # Per-output-column tag consumed by the fused epilogue.
        out_pad = self.dims_pad[-1]
        tag = np.full((1, out_pad), -1.0, np.float32)
        off = self.disc_sz
        for d in self.cont_dims:
            tag[0, off: off + d] = 0.0              # df chunk
            tag[0, off + d: off + 2 * d] = 1.0      # loc chunk (identity)
            tag[0, off + 2 * d: off + 3 * d] = 2.0  # scale chunk
            off += 3 * d
        self.col_tag = jnp.asarray(tag)

    def __call__(self, batch: jax.Array):
        # Single fused Pallas kernel does all the compute.
        slab = decoder_forward(batch, self.weights_bf16, self.biases_pad,
                               self.col_tag)
        slab = slab[:, : self.output_dim]           # drop lane padding

        # The rest is pure slicing / reshaping glue (no compute).
        disc_subset = slab[:, : self.disc_sz]
        cont_subset = slab[:, self.disc_sz:]

        x_disc = []
        off = 0
        for (n_feat, card), sz in zip(self.disc_dims, self.disc_dims_1d):
            logits = disc_subset[:, off: off + sz].reshape(-1, n_feat, card)
            x_disc.append({"logits": logits})
            off += sz

        x_cont = []
        off = 0
        for d in self.cont_dims:
            x_cont.append({
                "df": cont_subset[:, off: off + d],
                "loc": cont_subset[:, off + d: off + 2 * d],
                "scale": cont_subset[:, off + 2 * d: off + 3 * d],
            })
            off += 3 * d

        return x_disc, x_cont


# ----------------------------------------------------------------------------
# Plain-JAX f32 reference (for correctness check only)
# ----------------------------------------------------------------------------
def _reference_forward(dec: MultimodalDecoderPallas, z: jax.Array):
    h = z
    for w, b in zip(dec.weights_f32[:-1], dec.biases_f32[:-1]):
        h = jnp.maximum(h @ w + b, 0.0)
    y = h @ dec.weights_f32[-1] + dec.biases_f32[-1]

    disc = y[:, : dec.disc_sz]
    cont = y[:, dec.disc_sz:]
    x_disc, x_cont = [], []
    off = 0
    for (n_feat, card), sz in zip(dec.disc_dims, dec.disc_dims_1d):
        x_disc.append(disc[:, off: off + sz].reshape(-1, n_feat, card))
        off += sz
    off = 0
    for d in dec.cont_dims:
        c0 = cont[:, off: off + d]
        c1 = cont[:, off + d: off + 2 * d]
        c2 = cont[:, off + 2 * d: off + 3 * d]
        x_cont.append({"df": 1.0 / (jnp.exp(-0.5 * c0) * 27.5 + 2.5),
                       "loc": c1,
                       "scale": jnp.exp(0.5 * c2)})
        off += 3 * d
    return x_disc, x_cont


# ----------------------------------------------------------------------------
if __name__ == "__main__":
    key = jax.random.PRNGKey(0)
    key, zkey, pkey = jax.random.split(key, 3)

    batch = 8
    embedding_dim = 32
    compress_dims = [64, 48]
    disc_dims = [(3, 4), (2, 5)]   # disc_sz = 12 + 10 = 22
    cont_dims = [6, 7]             # cont_sz = 13 -> output_dim = 22 + 39 = 61

    decoder = MultimodalDecoderPallas(
        disc_dims=disc_dims,
        cont_dims=cont_dims,
        compress_dims=compress_dims,
        embedding_dim=embedding_dim,
        key=pkey,
    )

    z = jax.random.normal(zkey, (batch, embedding_dim), jnp.float32)

    x_disc, x_cont = decoder(z)

    for d in x_disc:
        jax.block_until_ready(d["logits"])
    for c in x_cont:
        jax.block_until_ready(c["df"])
        jax.block_until_ready(c["loc"])
        jax.block_until_ready(c["scale"])

    # shape checks (match PyTorch semantics)
    assert x_disc[0]["logits"].shape == (batch, 3, 4)
    assert x_disc[1]["logits"].shape == (batch, 2, 5)
    assert x_cont[0]["df"].shape == (batch, 6)
    assert x_cont[1]["scale"].shape == (batch, 7)

    # numerical check vs plain-JAX f32 reference (loose tol: kernel uses bf16
    # MXU operands + EUP approx reciprocal)
    ref_disc, ref_cont = _reference_forward(decoder, z)
    for got, ref in zip(x_disc, ref_disc):
        assert jnp.allclose(got["logits"], ref, rtol=5e-2, atol=5e-2)
    for got, ref in zip(x_cont, ref_cont):
        for k in ("df", "loc", "scale"):
            assert jnp.allclose(got[k], ref[k], rtol=5e-2, atol=5e-2)

    print("KERNEL_OK")
</pallas_src>

<mosaic_0001>
module attributes {stable_mosaic.version = 11 : i64} {
  func.func @kernel(%arg0: i32, %arg1: memref<8x128xf32, #tpu.memory_space<vmem>>, %arg2: memref<128x128xbf16, #tpu.memory_space<vmem>>, %arg3: memref<1x128xf32, #tpu.memory_space<vmem>>, %arg4: memref<128x128xbf16, #tpu.memory_space<vmem>>, %arg5: memref<1x128xf32, #tpu.memory_space<vmem>>, %arg6: memref<128x128xbf16, #tpu.memory_space<vmem>>, %arg7: memref<1x128xf32, #tpu.memory_space<vmem>>, %arg8: memref<1x128xf32, #tpu.memory_space<vmem>>, %arg9: memref<8x128xf32, #tpu.memory_space<vmem>>) attributes {dimension_semantics = [#tpu.dimension_semantics<parallel>], iteration_bounds = array<i64: 1>, scalar_prefetch = 0 : i64, scratch_operands = 0 : i64, tpu.core_type = #tpu.core_type<tc>, window_params = [{transform_indices = @transform_0, window_bounds = array<i64: 8, 128>}, {pipeline_mode = #tpu.pipeline_mode<synchronous>, transform_indices = @transform_1, window_bounds = array<i64: 128, 128>}, {pipeline_mode = #tpu.pipeline_mode<synchronous>, transform_indices = @transform_2, window_bounds = array<i64: 1, 128>}, {pipeline_mode = #tpu.pipeline_mode<synchronous>, transform_indices = @transform_3, window_bounds = array<i64: 128, 128>}, {pipeline_mode = #tpu.pipeline_mode<synchronous>, transform_indices = @transform_4, window_bounds = array<i64: 1, 128>}, {pipeline_mode = #tpu.pipeline_mode<synchronous>, transform_indices = @transform_5, window_bounds = array<i64: 128, 128>}, {pipeline_mode = #tpu.pipeline_mode<synchronous>, transform_indices = @transform_6, window_bounds = array<i64: 1, 128>}, {pipeline_mode = #tpu.pipeline_mode<synchronous>, transform_indices = @transform_7, window_bounds = array<i64: 1, 128>}, {transform_indices = @transform_8, window_bounds = array<i64: 8, 128>}]} {
    %c0 = arith.constant 0 : index
    %c0_0 = arith.constant 0 : index
    %0 = vector.load %arg1[%c0, %c0_0] : memref<8x128xf32, #tpu.memory_space<vmem>>, vector<8x128xf32>
    %c0_1 = arith.constant 0 : index
    %c0_2 = arith.constant 0 : index
    %1 = vector.load %arg2[%c0_1, %c0_2] : memref<128x128xbf16, #tpu.memory_space<vmem>>, vector<128x128xbf16>
    %c0_3 = arith.constant 0 : index
    %c0_4 = arith.constant 0 : index
    %2 = vector.load %arg3[%c0_3, %c0_4] : memref<1x128xf32, #tpu.memory_space<vmem>>, vector<1x128xf32>
    %3 = arith.truncf %0 : vector<8x128xf32> to vector<8x128xbf16>
    %cst = arith.constant dense<0.000000e+00> : vector<8x128xf32>
    %4 = tpu.matmul %3, %1, %cst {dimension_numbers = #tpu.dot_dimension_numbers<[1], [0], [0], [1], [0, 0, 1, 1], [], []>} : vector<8x128xbf16>, vector<128x128xbf16>, vector<8x128xf32> -> vector<8x128xf32>
    %5 = vector.broadcast %2 : vector<1x128xf32> to vector<8x128xf32>
    %6 = arith.addf %4, %5 : vector<8x128xf32>
    %cst_5 = arith.constant 0.000000e+00 : f32
    %7 = vector.broadcast %cst_5 : f32 to vector<8x128xf32>
    %8 = arith.maximumf %6, %7 : vector<8x128xf32>
    %c0_6 = arith.constant 0 : index
    %c0_7 = arith.constant 0 : index
    %9 = vector.load %arg4[%c0_6, %c0_7] : memref<128x128xbf16, #tpu.memory_space<vmem>>, vector<128x128xbf16>
    %c0_8 = arith.constant 0 : index
    %c0_9 = arith.constant 0 : index
    %10 = vector.load %arg5[%c0_8, %c0_9] : memref<1x128xf32, #tpu.memory_space<vmem>>, vector<1x128xf32>
    %11 = arith.truncf %8 : vector<8x128xf32> to vector<8x128xbf16>
    %cst_10 = arith.constant dense<0.000000e+00> : vector<8x128xf32>
    %12 = tpu.matmul %11, %9, %cst_10 {dimension_numbers = #tpu.dot_dimension_numbers<[1], [0], [0], [1], [0, 0, 1, 1], [], []>} : vector<8x128xbf16>, vector<128x128xbf16>, vector<8x128xf32> -> vector<8x128xf32>
    %13 = vector.broadcast %10 : vector<1x128xf32> to vector<8x128xf32>
    %14 = arith.addf %12, %13 : vector<8x128xf32>
    %cst_11 = arith.constant 0.000000e+00 : f32
    %15 = vector.broadcast %cst_11 : f32 to vector<8x128xf32>
    %16 = arith.maximumf %14, %15 : vector<8x128xf32>
    %c0_12 = arith.constant 0 : index
    %c0_13 = arith.constant 0 : index
    %17 = vector.load %arg6[%c0_12, %c0_13] : memref<128x128xbf16, #tpu.memory_space<vmem>>, vector<128x128xbf16>
    %c0_14 = arith.constant 0 : index
    %c0_15 = arith.constant 0 : index
    %18 = vector.load %arg7[%c0_14, %c0_15] : memref<1x128xf32, #tpu.memory_space<vmem>>, vector<1x128xf32>
    %19 = arith.truncf %16 : vector<8x128xf32> to vector<8x128xbf16>
    %cst_16 = arith.constant dense<0.000000e+00> : vector<8x128xf32>
    %20 = tpu.matmul %19, %17, %cst_16 {dimension_numbers = #tpu.dot_dimension_numbers<[1], [0], [0], [1], [0, 0, 1, 1], [], []>} : vector<8x128xbf16>, vector<128x128xbf16>, vector<8x128xf32> -> vector<8x128xf32>
    %21 = vector.broadcast %18 : vector<1x128xf32> to vector<8x128xf32>
    %22 = arith.addf %20, %21 : vector<8x128xf32>
    %c0_17 = arith.constant 0 : index
    %c0_18 = arith.constant 0 : index
    %23 = vector.load %arg8[%c0_17, %c0_18] : memref<1x128xf32, #tpu.memory_space<vmem>>, vector<1x128xf32>
    %cst_19 = arith.constant -5.000000e-01 : f32
    %24 = vector.broadcast %cst_19 : f32 to vector<8x128xf32>
    %25 = arith.mulf %22, %24 : vector<8x128xf32>
    %26 = math.exp %25 : vector<8x128xf32>
    %cst_20 = arith.constant 2.750000e+01 : f32
    %27 = vector.broadcast %cst_20 : f32 to vector<8x128xf32>
    %28 = arith.mulf %26, %27 : vector<8x128xf32>
    %cst_21 = arith.constant 2.500000e+00 : f32
    %29 = vector.broadcast %cst_21 : f32 to vector<8x128xf32>
    %30 = arith.addf %28, %29 : vector<8x128xf32>
    %31 = tpu.reciprocal %30 {approx = true} : vector<8x128xf32> -> vector<8x128xf32>
    %cst_22 = arith.constant 5.000000e-01 : f32
    %32 = vector.broadcast %cst_22 : f32 to vector<8x128xf32>
    %33 = arith.mulf %22, %32 : vector<8x128xf32>
    %34 = math.exp %33 : vector<8x128xf32>
    %cst_23 = arith.constant 0.000000e+00 : f32
    %35 = vector.broadcast %cst_23 : f32 to vector<1x128xf32>
    %36 = arith.cmpf oeq, %23, %35 : vector<1x128xf32>
    %cst_24 = arith.constant 2.000000e+00 : f32
    %37 = vector.broadcast %cst_24 : f32 to vector<1x128xf32>
    %38 = arith.cmpf oeq, %23, %37 : vector<1x128xf32>
    %39 = vector.shape_cast %38 : vector<1x128xi1> to vector<1x128xi1>
    %40 = vector.broadcast %39 : vector<1x128xi1> to vector<8x128xi1>
    %41 = arith.select %40, %34, %22 : vector<8x128xi1>, vector<8x128xf32>
    %42 = vector.shape_cast %36 : vector<1x128xi1> to vector<1x128xi1>
    %43 = vector.broadcast %42 : vector<1x128xi1> to vector<8x128xi1>
    %44 = arith.select %43, %31, %41 : vector<8x128xi1>, vector<8x128xf32>
    %c0_25 = arith.constant 0 : index
    %c0_26 = arith.constant 0 : index
    %45 = vector.load %arg9[%c0_25, %c0_26] : memref<8x128xf32, #tpu.memory_space<vmem>>, vector<8x128xf32>
    tpu.vector_store %arg9[%c0_25, %c0_26], %44 {strides = array<i32>} : memref<8x128xf32, #tpu.memory_space<vmem>>, vector<8x128xf32>,
    return
  }
  func.func @transform_0(%arg0: i32) -> (i32, i32) {
    %c0_i32 = arith.constant 0 : i32
    %c0_i32_0 = arith.constant 0 : i32
    return %arg0, %c0_i32 : i32, i32
  }
  func.func @transform_1(%arg0: i32) -> (i32, i32) {
    %c0_i32 = arith.constant 0 : i32
    %c0_i32_0 = arith.constant 0 : i32
    %c0_i32_1 = arith.constant 0 : i32
    return %c0_i32, %c0_i32_0 : i32, i32
  }
  func.func @transform_2(%arg0: i32) -> (i32, i32) {
    %c0_i32 = arith.constant 0 : i32
    %c0_i32_0 = arith.constant 0 : i32
    %c0_i32_1 = arith.constant 0 : i32
    return %c0_i32, %c0_i32_0 : i32, i32
  }
  func.func @transform_3(%arg0: i32) -> (i32, i32) {
    %c0_i32 = arith.constant 0 : i32
    %c0_i32_0 = arith.constant 0 : i32
    %c0_i32_1 = arith.constant 0 : i32
    return %c0_i32, %c0_i32_0 : i32, i32
  }
  func.func @transform_4(%arg0: i32) -> (i32, i32) {
    %c0_i32 = arith.constant 0 : i32
    %c0_i32_0 = arith.constant 0 : i32
    %c0_i32_1 = arith.constant 0 : i32
    return %c0_i32, %c0_i32_0 : i32, i32
  }
  func.func @transform_5(%arg0: i32) -> (i32, i32) {
    %c0_i32 = arith.constant 0 : i32
    %c0_i32_0 = arith.constant 0 : i32
    %c0_i32_1 = arith.constant 0 : i32
    return %c0_i32, %c0_i32_0 : i32, i32
  }
  func.func @transform_6(%arg0: i32) -> (i32, i32) {
    %c0_i32 = arith.constant 0 : i32
    %c0_i32_0 = arith.constant 0 : i32
    %c0_i32_1 = arith.constant 0 : i32
    return %c0_i32, %c0_i32_0 : i32, i32
  }
  func.func @transform_7(%arg0: i32) -> (i32, i32) {
    %c0_i32 = arith.constant 0 : i32
    %c0_i32_0 = arith.constant 0 : i32
    %c0_i32_1 = arith.constant 0 : i32
    return %c0_i32, %c0_i32_0 : i32, i32
  }
  func.func @transform_8(%arg0: i32) -> (i32, i32) {
    %c0_i32 = arith.constant 0 : i32
    %c0_i32_0 = arith.constant 0 : i32
    return %arg0, %c0_i32 : i32, i32
  }
}

</mosaic_0001>

<bundles_post_ra>
// kernel: tpu_custom_call.1
= control target key start
LH: loop header
LB: loop body
LE: loop exit
PB: predicated region body
PF: predicated region fallthrough
CT: control target
= control target key end

     0   :  { %13 = vsyncpa [#allocation3], 0  ;;  %s725_s0 = inlined_call_operand.hbm [shape: f32[8,128], index: 0, kind: input, shape index: {}]   ;;  %s726_s1 = inlined_call_operand.hbm [shape: bf16[128,128], index: 1, kind: input, shape index: {}]   ;;  %s727_s2 = inlined_call_operand.vmem [shape: f32[1,128], index: 2, kind: input, shape index: {}]   ;;  %s728_s3 = inlined_call_operand.hbm [shape: bf16[128,128], index: 3, kind: input, shape index: {}]   ;;  %s729_s4 = inlined_call_operand.vmem [shape: f32[1,128], index: 4, kind: input, shape index: {}]   ;;  %s730_s5 = inlined_call_operand.hbm [shape: bf16[128,128], index: 5, kind: input, shape index: {}]   ;;  %s731_s6 = inlined_call_operand.vmem [shape: f32[1,128], index: 6, kind: input, shape index: {}]   ;;  %s732_s7 = inlined_call_operand.vmem [shape: f32[1,128], index: 7, kind: input, shape index: {}]   ;;  %s733_s8 = inlined_call_operand.hbm [shape: f32[8,128], index: 8, kind: output, shape index: {}]  }
   0x1   :  { %14 = vsyncpa [#allocation6], 0 }
   0x2   :  { %15 = vsyncpa [#allocation9], 0  ;;  %s32_s29 = sshll.u32 %s726_s1, 4  ;;  %s33_s29 = int_to_ptr.hbm [resolvable:$true] %s32_s29 }
   0x3   :  { %16 = vsyncpa [#allocation4], 0  ;;  %s645_s30 = smov [#allocation5]   ;;  %s22_s12 = sshll.u32 %s725_s0, 4  ;;  %s23_s12 = int_to_ptr.hbm [resolvable:$true] %s22_s12 }
   0x4   :  { %s34_s9 = sshll.u32 %s645_s30, 4  ;;  %s646_s13 = smov 64   ;;  %s35_s9 = int_to_ptr.vmem [resolvable:$true] %s34_s9 }
   0x5   :  { %s647_s14 = smov 4   ;;  %s648_s15 = smov [#allocation2]  }
   0x6   :  { %40 = dma.hbm_to_vmem [thread:$0]  %s33_s29, 1024, %s35_s9, [#allocation6], %s646_s13, %s646_s13, %s647_s14  }
   0x7   :  { %s24_s16 = sshll.u32 %s648_s15, 4  ;;  %s47_s19 = sshll.u32 %s728_s3, 4  ;;  %s25_s16 = int_to_ptr.vmem [resolvable:$true] %s24_s16  ;;  %s48_s19 = int_to_ptr.hbm [resolvable:$true] %s47_s19 }
   0x8   :  { %27 = dma.hbm_to_vmem [thread:$0]  %s23_s12, 128, %s25_s16, [#allocation3]  }
   0x9   :  { %s62_s21 = sshll.u32 %s730_s5, 4  ;;  %s649_s22 = smov [#allocation7]   ;;  %s63_s21 = int_to_ptr.hbm [resolvable:$true] %s62_s21 }
   0xa   :  { %s49_s23 = sshll.u32 %s649_s22, 4  ;;  %s650_s0 = smov [#allocation8]   ;;  %s50_s23 = int_to_ptr.vmem [resolvable:$true] %s49_s23 }
   0xb   :  { %55 = dma.hbm_to_vmem [thread:$0]  %s48_s19, 1024, %s50_s23, [#allocation6], %s646_s13, %s646_s13, %s647_s14  }
   0xc   :  { %s64_s24 = sshll.u32 %s650_s0, 4  ;;  %s65_s24 = int_to_ptr.vmem [resolvable:$true] %s64_s24 }
   0xd   :  { %70 = dma.hbm_to_vmem [thread:$0]  %s63_s21, 1024, %s65_s24, [#allocation9], %s646_s13, %s646_s13, %s647_s14  }
   0xe   :  { %637 = dma.done.wait [#allocation3], 128  }
   0xf   :  { %638 = vsyncadd [#allocation3], 4294967168 }
  0x10   :  { %639 = dma.done.wait [#allocation6], 2048  }
  0x11   :  { %640 = vsyncadd [#allocation6], 4294965248 }
  0x12   :  { %641 = dma.done.wait [#allocation9], 1024  }
  0x13   :  { %642 = vsyncadd [#allocation9], 4294966272  ;;  %v483_v0 = vld [vmem:[#allocation5 + $0x38] sm:$0xff]  ;;  %v482_v1 = vld [vmem:[#allocation5 + $0x30] sm:$0xff]  ;;  %v651_v49 = vmov 0   ;;  %s368_s9 = sshll.u32 %s733_s8, 4  ;;  %s369_s9 = int_to_ptr.hbm [resolvable:$true] %s368_s9 }
  0x14   :  { %161 = vmatpush.bf16.msra.mxu0 %v483_v0  ;;  %v491_v2 = vld [vmem:[#allocation7 + $0x38] sm:$0xff]  ;;  %v490_v3 = vld [vmem:[#allocation7 + $0x30] sm:$0xff]  ;;  %v481_v4 = vld [vmem:[#allocation5 + $0x28] sm:$0xff] }
  0x15   :  { %244 = vmatpush.bf16.msra.mxu1 %v491_v2  ;;  %v489_v5 = vld [vmem:[#allocation7 + $0x28] sm:$0xff]  ;;  %v480_v6 = vld [vmem:[#allocation5 + $0x20] sm:$0xff]  ;;  %v479_v8 = vld [vmem:[#allocation5 + $0x18] sm:$0xff] }
  0x16   :  { %v488_v7 = vld [vmem:[#allocation7 + $0x20] sm:$0xff]  ;;  %v487_v9 = vld [vmem:[#allocation7 + $0x18] sm:$0xff]  ;;  %v478_v10 = vld [vmem:[#allocation5 + $0x10] sm:$0xff] }
  0x17   :  { %v486_v11 = vld [vmem:[#allocation7 + $0x10] sm:$0xff]  ;;  %v477_v12 = vld [vmem:[#allocation5 + $0x8] sm:$0xff]  ;;  %v476_v13 = vld [vmem:[#allocation5] sm:$0xff] }
  0x18   :  { %162 = vmatpush.bf16.msra.mxu0 %v482_v1  ;;  %v91_v14 = vld [vmem:[#allocation2] sm:$0xff]  ;;  %v485_v16 = vld [vmem:[#allocation7 + $0x8] sm:$0xff]  ;;  %v484_v17 = vld [vmem:[#allocation7] sm:$0xff] }
  0x19   :  { %245 = vmatpush.bf16.msra.mxu1 %v490_v3  ;;  %v109_v15 = vpack.c.bf16 %v91_v14, %v91_v14  ;;  %v499_v18 = vld [vmem:[#allocation8 + $0x38] sm:$0xff]  ;;  %v498_v19 = vld [vmem:[#allocation8 + $0x30] sm:$0xff]  ;;  %v497_v20 = vld [vmem:[#allocation8 + $0x28] sm:$0xff] }
  0x1a   :  { %327 = vmatpush.bf16.msra.mxu2 %v499_v18  ;;  %v496_v21 = vld [vmem:[#allocation8 + $0x20] sm:$0xff]  ;;  %v495_v22 = vld [vmem:[#allocation8 + $0x18] sm:$0xff]  ;;  %v494_v23 = vld [vmem:[#allocation8 + $0x10] sm:$0xff] }
  0x1b   :  { %v508_v24 = vld [vmem:[%s727_s2] ss:$0 sm:$0xff]  ;;  %v493_v30 = vld [vmem:[#allocation8 + $0x8] sm:$0xff]  ;;  %v492_v31 = vld [vmem:[#allocation8] sm:$0xff] }
  0x1c   :  { %163 = vmatpush.bf16.msra.mxu0 %v481_v4  ;;  %v509_v32 = vld [vmem:[%s729_s4] ss:$0 sm:$0xff]  ;;  %s652_s4 = smov [#allocation10]  }
  0x1d   :  { %246 = vmatpush.bf16.msra.mxu1 %v489_v5  ;;  %v510_v38 = vld [vmem:[%s731_s6] ss:$0 sm:$0xff]  ;;  %s366_s6 = sshll.u32 %s652_s4, 4  ;;  %s367_s6 = int_to_ptr.vmem [resolvable:$true] %s366_s6 }
  0x1e   :  { %328 = vmatpush.bf16.msra.mxu2 %v498_v19  ;;  %v340_v44 = vld [vmem:[%s732_s7] sm:$0x1] }
  0x1f   :  { %vm351_vm0 = vcmp.eq.f32.partialorder %v340_v44, 2.0  ;;  %vm350_vm1 = vcmp.eq.f32.partialorder %v340_v44, 0.0 }
  0x20   :  { %164 = vmatpush.bf16.msra.mxu0 %v480_v6  ;;  %v352_v50 = vsel %vm351_vm0, 1, %v651_v49  ;;  %v356_v51 = vsel %vm350_vm1, 1, %v651_v49 }
  0x21   :  { %247 = vmatpush.bf16.msra.mxu1 %v488_v7  ;;  %v353_v53 = vperm.slane %v352_v50, 0  ;;  %v357_v54 = vperm.slane %v356_v51, 0 }
  0x22   :  { %329 = vmatpush.bf16.msra.mxu2 %v497_v20 }
  0x23   :  { %vm354_vm2 = vcmp.eq.s32.totalorder %v353_v53, 1  ;;  %vm358_vm3 = vcmp.eq.s32.totalorder %v357_v54, 1 }
  0x24   :  { %165 = vmatpush.bf16.msra.mxu0 %v479_v8 }
  0x25   :  { %248 = vmatpush.bf16.msra.mxu1 %v487_v9 }
  0x26   :  { %330 = vmatpush.bf16.msra.mxu2 %v496_v21 }
  0x28   :  { %166 = vmatpush.bf16.msra.mxu0 %v478_v10 }
  0x29   :  { %249 = vmatpush.bf16.msra.mxu1 %v486_v11 }
  0x2a   :  { %331 = vmatpush.bf16.msra.mxu2 %v495_v22 }
  0x2c   :  { %167 = vmatpush.bf16.msra.mxu0 %v477_v12 }
  0x2d   :  { %250 = vmatpush.bf16.msra.mxu1 %v485_v16 }
  0x2e   :  { %332 = vmatpush.bf16.msra.mxu2 %v494_v23 }
  0x30   :  { %168 = vmatpush.bf16.msra.mxu0 %v476_v13 }
  0x31   :  { %251 = vmatpush.bf16.msra.mxu1 %v484_v17 }
  0x32   :  { %333 = vmatpush.bf16.msra.mxu2 %v493_v30 }
  0x33   :  { %169 = vmatmul.bf16.vlgmr.msra.gmra.mxu0 %v109_v15 }
  0x36   :  { %334 = vmatpush.bf16.msra.mxu2 %v492_v31 }
  0xb0   :  { %v170_v25 = vpop.f32.mrf.mxu0 }
  0xb1   :  { %v171_v26 = vadd.f32 %v508_v24, %v170_v25 }
  0xb3   :  { %v174_v27 = vmax.f32 %v171_v26, 0.0 }
  0xb5   :  { %v192_v28 = vpack.c.bf16 %v174_v27, %v174_v27 }
  0xb7   :  { %252 = vmatmul.bf16.vlgmr.msra.gmra.mxu1 %v192_v28 }
  0xb8   :  { %v172_v29 = vpop.f32.mrf.mxu0 }
 0x134   :  { %v253_v33 = vpop.f32.mrf.mxu1 }
 0x135   :  { %v254_v34 = vadd.f32 %v509_v32, %v253_v33 }
 0x137   :  { %v257_v35 = vmax.f32 %v254_v34, 0.0 }
 0x139   :  { %v275_v36 = vpack.c.bf16 %v257_v35, %v257_v35 }
 0x13b   :  { %335 = vmatmul.bf16.vlgmr.msra.gmra.mxu2 %v275_v36 }
 0x13c   :  { %v255_v37 = vpop.f32.mrf.mxu1 }
 0x1be   :  { %v336_v39 = vpop.f32.mrf.mxu2 }
 0x1bf   :  { %v337_v40 = vadd.f32 %v510_v38, %v336_v39 }
 0x1c1   :  { %v341_v41 = vmul.f32 -0.5, %v337_v40  ;;  %v347_v43 = vmul.f32 0.5, %v337_v40 }
 0x1c3   :  { %v342_v42 = vmul.f32 1.442695, %v341_v41  ;;  %v348_v46 = vmul.f32 1.442695, %v347_v43 }
 0x1c5   :  { %511 = vpow2.f32 %v342_v42 }
 0x1c6   :  { %v338_v45 = vpop.f32.mrf.mxu2  ;;  %513 = vpow2.f32 %v348_v46 }
 0x1cb   :  { %v512_v47 = vpop.eup %511 }
 0x1cc   :  { %v344_v48 = vmul.f32 27.5, %v512_v47  ;;  %v514_v55 = vpop.eup %513 }
 0x1cd   :  { %v355_v57 = vsel %vm354_vm2, %v514_v55, %v337_v40 }
 0x1ce   :  { %v345_v52 = vadd.f32 2.5, %v344_v48 }
 0x1d0   :  { %515 = vrcp.f32 %v345_v52 }
 0x1d6   :  { %v516_v56 = vpop.eup %515 }
 0x1d7   :  { %v359_v58 = vsel %vm358_vm3, %v516_v56, %v355_v57 }
 0x1d8   :  { %360 = vst [vmem:[#allocation10] sm:$0xff] %v359_v58 }
 0x1d9   :  { %371 = dma.vmem_to_hbm [thread:$0]  %s367_s6, 128, %s369_s9, [#allocation4]  }
 0x1da   :  { %643 = dma.done.wait [#allocation4], 128  }
 0x1db   :  { %644 = vsyncadd [#allocation4], 4294967168 }
 0x1dc   :  { %376 = vsyncpa [#allocation3], 1 }
 0x1dd   :  { %377 = vsyncpa [#allocation6], 1 }
 0x1de   :  { %378 = vsyncpa [#allocation9], 1 }
 0x1df   :  { %379 = vsyncpa [#allocation4], 1 }

</bundles_post_ra>
